<compile_context>
chip_gen: v7x
topology: tpu7x:2x2x1
jax: 0.10.0
libtpu: 0.0.40
codegen_flags: <defaults>
</compile_context>

<pallas_src>
import numpy as np
import jax
import jax.numpy as jnp
from jax.experimental import pallas as pl
from jax.experimental.pallas import tpu as pltpu


# ------------------------------ setup (host) ---------------------------------
def make_spectral_operator(complex_weight, H, W):
    """Fold permute -> rfft2 -> (* weight) -> irfft2 -> permute into a
    per-channel real operator MT such that out[c] = x[c] @ MT[c], where x[c]
    is the channel-c image flattened row-major over (H, W)."""
    cw = np.asarray(complex_weight, dtype=np.float64)            # (W, H//2+1, C, 2)
    weight = cw[..., 0] + 1j * cw[..., 1]                        # (W, H//2+1, C)
    C = weight.shape[-1]
    N = H * W
    basis = np.eye(N, dtype=np.float64).reshape(N, H, W)         # pixel basis images
    x = np.broadcast_to(basis[:, None, :, :], (N, C, H, W))      # basis idx as batch
    xp = np.transpose(x, (0, 3, 2, 1))                           # (N, W, H, C)
    xf = np.fft.rfft2(xp, axes=(1, 2), norm='ortho')
    xf = xf * weight[None]
    xi = np.fft.irfft2(xf, s=(W, H), axes=(1, 2), norm='ortho')  # (N, W, H, C)
    pout = np.transpose(xi, (0, 3, 2, 1))                        # (N, C, H, W)
    cols = pout.reshape(N, C, N)                                 # (n_in, c, m_out)
    mt = np.transpose(cols, (1, 0, 2))                           # (C, N_in, N_out)
    return jnp.asarray(mt, dtype=jnp.float32)


# --------------------------------- kernel ------------------------------------
def spectral_gating_kernel(x_ref, mt_ref, o_ref):
    # x_ref: (1, C, N) f32, mt_ref: (C, N, N) f32, o_ref: (1, C, N) f32
    x = x_ref[0]                                                 # (C, N)
    C = x.shape[0]
    rows = []
    for c in range(C):                                           # static unroll
        rows.append(jnp.dot(x[c:c + 1, :], mt_ref[c],
                            preferred_element_type=jnp.float32))  # (1, N), 256 lanes
    o_ref[0] = jnp.concatenate(rows, axis=0)                     # (C, N)


# -------------------------------- wrapper ------------------------------------
def spectral_gating_forward(x, mt):
    """x: (B, C, H, W) float; mt: (C, H*W, H*W) float32 folded operator."""
    B, C, H, W = x.shape
    N = H * W
    x_flat = x.reshape(B, C, N).astype(jnp.float32)

    out_flat = pl.pallas_call(
        spectral_gating_kernel,
        out_shape=jax.ShapeDtypeStruct((B, C, N), jnp.float32),
        grid_spec=pltpu.PrefetchScalarGridSpec(
            num_scalar_prefetch=0,
            grid=(B,),
            in_specs=[
                pl.BlockSpec((1, C, N), lambda b: (b, 0, 0)),    # per-batch tokens
                pl.BlockSpec((C, N, N), lambda b: (0, 0, 0)),    # grid-invariant operator
            ],
            out_specs=pl.BlockSpec((1, C, N), lambda b: (b, 0, 0)),
        ),
        compiler_params=pltpu.CompilerParams(
            dimension_semantics=("parallel",),                   # independent batch elems
            vmem_limit_bytes=32 * 1024 * 1024,                   # << 64 MiB v7x physical
        ),
    )(x_flat, mt)
    return out_flat.reshape(B, C, H, W)


# ------------------------------- reference -----------------------------------
def reference_forward(x, complex_weight):
    """Straight numpy transcription of the PyTorch forward (float64)."""
    xp = np.transpose(np.asarray(x, np.float64), (0, 3, 2, 1))   # (B, W, H, C)
    cw = np.asarray(complex_weight, np.float64)
    w = cw[..., 0] + 1j * cw[..., 1]
    xf = np.fft.rfft2(xp, axes=(1, 2), norm='ortho')
    xf = xf * w[None]
    a, b = xp.shape[1], xp.shape[2]
    xi = np.fft.irfft2(xf, s=(a, b), axes=(1, 2), norm='ortho')
    return np.transpose(xi, (0, 3, 2, 1))                        # (B, C, H, W)


if __name__ == "__main__":
    key = jax.random.PRNGKey(0)
    kx, kw = jax.random.split(key)

    B, C, H, W = 2, 4, 16, 16
    x = jax.random.normal(kx, (B, C, H, W), dtype=jnp.float32)
    # complex_weight ~ randn(h, w//2+1, dim, 2) * 0.02 with h=W, w=H, dim=C
    complex_weight = (jax.random.normal(kw, (W, H // 2 + 1, C, 2),
                                        dtype=jnp.float32) * 0.02)

    mt = make_spectral_operator(np.asarray(complex_weight), H, W)
    out = spectral_gating_forward(x, mt)
    out = jax.block_until_ready(out)

    assert out.shape == (B, C, H, W) and out.dtype == jnp.float32
    ref = reference_forward(np.asarray(x), np.asarray(complex_weight))
    np.testing.assert_allclose(np.asarray(out), ref, atol=5e-3, rtol=5e-3)
    print("KERNEL_OK")
</pallas_src>

<mosaic_0001>
module attributes {stable_mosaic.version = 11 : i64} {
  func.func @spectral_gating_kernel(%arg0: i32, %arg1: memref<1x4x256xf32, #tpu.memory_space<vmem>>, %arg2: memref<4x256x256xf32, #tpu.memory_space<vmem>>, %arg3: memref<1x4x256xf32, #tpu.memory_space<vmem>>) attributes {dimension_semantics = [#tpu.dimension_semantics<parallel>], iteration_bounds = array<i64: 2>, scalar_prefetch = 0 : i64, scratch_operands = 0 : i64, tpu.core_type = #tpu.core_type<tc>, window_params = [{transform_indices = @transform_0, window_bounds = array<i64: 1, 4, 256>}, {pipeline_mode = #tpu.pipeline_mode<synchronous>, transform_indices = @transform_1, window_bounds = array<i64: 4, 256, 256>}, {transform_indices = @transform_2, window_bounds = array<i64: 1, 4, 256>}]} {
    %c0 = arith.constant 0 : index
    %c0_0 = arith.constant 0 : index
    %c0_1 = arith.constant 0 : index
    %0 = vector.load %arg1[%c0, %c0_0, %c0_1] : memref<1x4x256xf32, #tpu.memory_space<vmem>>, vector<1x4x256xf32>
    %1 = vector.shape_cast %0 : vector<1x4x256xf32> to vector<4x256xf32>
    %2 = vector.extract_strided_slice %1 {offsets = [0, 0], sizes = [1, 256], strides = [1, 1]} : vector<4x256xf32> to vector<1x256xf32>
    %c0_2 = arith.constant 0 : index
    %c0_3 = arith.constant 0 : index
    %c0_4 = arith.constant 0 : index
    %3 = vector.load %arg2[%c0_2, %c0_3, %c0_4] : memref<4x256x256xf32, #tpu.memory_space<vmem>>, vector<1x256x256xf32>
    %4 = vector.shape_cast %3 : vector<1x256x256xf32> to vector<256x256xf32>
    %cst = arith.constant dense<0.000000e+00> : vector<1x256xf32>
    %5 = tpu.matmul %2, %4, %cst {dimension_numbers = #tpu.dot_dimension_numbers<[1], [0], [0], [1], [0, 0, 1, 1], [], []>} : vector<1x256xf32>, vector<256x256xf32>, vector<1x256xf32> -> vector<1x256xf32>
    %6 = vector.extract_strided_slice %1 {offsets = [1, 0], sizes = [1, 256], strides = [1, 1]} : vector<4x256xf32> to vector<1x256xf32>
    %c1 = arith.constant 1 : index
    %c0_5 = arith.constant 0 : index
    %c0_6 = arith.constant 0 : index
    %7 = vector.load %arg2[%c1, %c0_5, %c0_6] : memref<4x256x256xf32, #tpu.memory_space<vmem>>, vector<1x256x256xf32>
    %8 = vector.shape_cast %7 : vector<1x256x256xf32> to vector<256x256xf32>
    %cst_7 = arith.constant dense<0.000000e+00> : vector<1x256xf32>
    %9 = tpu.matmul %6, %8, %cst_7 {dimension_numbers = #tpu.dot_dimension_numbers<[1], [0], [0], [1], [0, 0, 1, 1], [], []>} : vector<1x256xf32>, vector<256x256xf32>, vector<1x256xf32> -> vector<1x256xf32>
    %10 = vector.extract_strided_slice %1 {offsets = [2, 0], sizes = [1, 256], strides = [1, 1]} : vector<4x256xf32> to vector<1x256xf32>
    %c2 = arith.constant 2 : index
    %c0_8 = arith.constant 0 : index
    %c0_9 = arith.constant 0 : index
    %11 = vector.load %arg2[%c2, %c0_8, %c0_9] : memref<4x256x256xf32, #tpu.memory_space<vmem>>, vector<1x256x256xf32>
    %12 = vector.shape_cast %11 : vector<1x256x256xf32> to vector<256x256xf32>
    %cst_10 = arith.constant dense<0.000000e+00> : vector<1x256xf32>
    %13 = tpu.matmul %10, %12, %cst_10 {dimension_numbers = #tpu.dot_dimension_numbers<[1], [0], [0], [1], [0, 0, 1, 1], [], []>} : vector<1x256xf32>, vector<256x256xf32>, vector<1x256xf32> -> vector<1x256xf32>
    %14 = vector.extract_strided_slice %1 {offsets = [3, 0], sizes = [1, 256], strides = [1, 1]} : vector<4x256xf32> to vector<1x256xf32>
    %c3 = arith.constant 3 : index
    %c0_11 = arith.constant 0 : index
    %c0_12 = arith.constant 0 : index
    %15 = vector.load %arg2[%c3, %c0_11, %c0_12] : memref<4x256x256xf32, #tpu.memory_space<vmem>>, vector<1x256x256xf32>
    %16 = vector.shape_cast %15 : vector<1x256x256xf32> to vector<256x256xf32>
    %cst_13 = arith.constant dense<0.000000e+00> : vector<1x256xf32>
    %17 = tpu.matmul %14, %16, %cst_13 {dimension_numbers = #tpu.dot_dimension_numbers<[1], [0], [0], [1], [0, 0, 1, 1], [], []>} : vector<1x256xf32>, vector<256x256xf32>, vector<1x256xf32> -> vector<1x256xf32>
    %18 = tpu.concatenate %5, %9, %13, %17 in 0 : vector<1x256xf32>, vector<1x256xf32>, vector<1x256xf32>, vector<1x256xf32> -> vector<4x256xf32>
    %c0_14 = arith.constant 0 : index
    %c0_15 = arith.constant 0 : index
    %c0_16 = arith.constant 0 : index
    %19 = vector.load %arg3[%c0_14, %c0_15, %c0_16] : memref<1x4x256xf32, #tpu.memory_space<vmem>>, vector<1x4x256xf32>
    %20 = vector.shape_cast %19 : vector<1x4x256xf32> to vector<4x256xf32>
    %21 = vector.shape_cast %18 : vector<4x256xf32> to vector<1x4x256xf32>
    tpu.vector_store %arg3[%c0_14, %c0_15, %c0_16], %21 {strides = array<i32>} : memref<1x4x256xf32, #tpu.memory_space<vmem>>, vector<1x4x256xf32>,
    return
  }
  func.func @transform_0(%arg0: i32) -> (i32, i32, i32) {
    %c0_i32 = arith.constant 0 : i32
    %c0_i32_0 = arith.constant 0 : i32
    %c0_i32_1 = arith.constant 0 : i32
    return %arg0, %c0_i32, %c0_i32_0 : i32, i32, i32
  }
  func.func @transform_1(%arg0: i32) -> (i32, i32, i32) {
    %c0_i32 = arith.constant 0 : i32
    %c0_i32_0 = arith.constant 0 : i32
    %c0_i32_1 = arith.constant 0 : i32
    %c0_i32_2 = arith.constant 0 : i32
    return %c0_i32, %c0_i32_0, %c0_i32_1 : i32, i32, i32
  }
  func.func @transform_2(%arg0: i32) -> (i32, i32, i32) {
    %c0_i32 = arith.constant 0 : i32
    %c0_i32_0 = arith.constant 0 : i32
    %c0_i32_1 = arith.constant 0 : i32
    return %arg0, %c0_i32, %c0_i32_0 : i32, i32, i32
  }
}

</mosaic_0001>

<bundles_post_ra>
// kernel: tpu_custom_call.1
= control target key start
LH: loop header
LB: loop body
LE: loop exit
PB: predicated region body
PF: predicated region fallthrough
CT: control target
= control target key end

     0   :  { %7 = vsyncpa [#allocation3], 0  ;;  %s1599_s0 = inlined_call_operand.hbm [shape: f32[2,4,256], index: 0, kind: input, shape index: {}]   ;;  %s1600_s1 = inlined_call_operand.hbm [shape: f32[4,256,256], index: 1, kind: input, shape index: {}]   ;;  %s1601_s2 = inlined_call_operand.hbm [shape: f32[2,4,256], index: 2, kind: output, shape index: {}]  }
   0x1   :  { %9 = vsyncpa [#allocation3 + $0x1], 0 }
   0x2   :  { %10 = vsyncpa [#allocation6], 0 }
   0x3   :  { %11 = vsyncpa [#allocation4], 0 }
   0x4   :  { %13 = vsyncpa [#allocation4 + $0x1], 0  ;;  %s1370_s9 = smov 0   ;;  %s1372_s10 = smov 0  }
   0x5   :  { %s1374_s11 = smov 0   ;;  %s1376_s12 = smov 0  }
   0x6 LB: > { %s1391_s13 = sadd.s32 4294967295, %s1348_s12   ;;  %s887_s14 = sadd.s32 4294967294, %s1348_s12   ;;  %s1348_s12 = sphi %s1376_s12, %s1621_s12   ;;  %s1344_s11 = sphi %s1374_s11, %s1620_s11   ;;  %s1340_s10 = sphi %s1372_s10, %s1619_s10   ;;  %s1336_s9 = sphi %s1370_s9, %s1618_s9  }
   0x7   : > { %p39_p0 = scmp.ne.s32.totalorder %s1340_s10, %s1336_s9  ;;  %p1602_p1 = scmp.eq.s32.totalorder %s1391_s13, 0 }
   0x8   : > { %p90_p3 = scmp.eq.s32.totalorder %s887_s14, 1  ;;  %p888_p5 = scmp.ge.s32.totalorder %s1348_s12, 1 }
   0x9   : > { %p1400_p4 = por %p1602_p1, %p39_p0  ;;  %p97_p7 = scmp.lt.s32.totalorder %s1348_s12, 3 }
   0xa   : > { %p1405_p6 = por %p90_p3, %p39_p0  ;;  %s1350_s18 = smov [#allocation5]  }
   0xb   : > { %s1605_s15 = scalar_select %p1400_p4, 1, 0 }
   0xc   : > { %s1606_s16 = scalar_select %p1405_p6, 1, 0 }
   0xd   : > { %p1410_p8 = pnand %p888_p5, %p97_p7  ;;  %s109_s19 = sshll.u32 %s1350_s18, 4  ;;  %s1414_s19 = int_to_ptr.vmem [resolvable:$true] %s109_s19 }
   0xe   : > { %s1426_s21 = sadd.s32 1, %s1348_s12   ;;  %s26_s22 = sadd.s32 1, %s1344_s11 }
   0xf   : > { %s1607_s17 = scalar_select %p1410_p8, 1, 0 }
  0x10   : > { %p1169_p9 = pneg %p1410_p8  ;;  %s23_s23 = ssub.s32 %s1348_s12, %s1426_s21 }
  0x11   : > { %s1220_s26 = scalar_lea.hbm %s1600_s1, 32768 }
  0x12   : > { %p1421_p11 = pnand %p1169_p9, %p1602_p1  ;;  %p1221_p12 = scmp.ne.s32.totalorder %s1600_s1, %s1220_s26 }
  0x13   : > { %p1227_p5 = scmp.lt.u32.totalorder %s1220_s26, %s1600_s1 }
  0x14   : > { %p1222_p13 = pneg %p1421_p11 }
  0x16   : > { %p1223_p0 = pnand %p1222_p13, %p1221_p12 }
  0x18   : > { %p1224_p3 = pneg %p1223_p0 }
  0x1a   : > { %p1229_p7 = pnand %p1227_p5, %p1224_p3 }
  0x1c   : > { %1232 = shalt.err (!%p1229_p7)
}
  0x1d   : > { %s1233_s3 = scalar_lea.vmem %s1414_s19, 32768  ;;  %p1241_p2 = scmp.lt.s32.totalorder %s1414_s19, %s1414_s19 }
  0x1e   : > { %p1234_p9 = scmp.ne.s32.totalorder %s1414_s19, %s1233_s3  ;;  %p1242_p6 = scmp.lt.s32.totalorder %s1233_s3, %s1233_s3 }
  0x20   : > { %p1236_p10 = pnand %p1234_p9, %p1222_p13  ;;  %p1243_p4 = por %p1242_p6, %p1241_p2 }
  0x22   : > { %p1237_p1 = pneg %p1236_p10 }
  0x24   : > { %p1244_p8 = pnand %p1243_p4, %p1237_p1 }
  0x26   : > { %1247 = shalt.err (!%p1244_p8)
}
  0x27   : > { %s1351_s4 = smov 256   ;;  %s1352_s5 = smov 16  }
  0x28   : > { %1172 = dma.hbm_to_vmem [thread:$0]  (!%p1421_p11), %s1600_s1, 32768, %s1414_s19, [#allocation6], %s1351_s4, %s1351_s4, %s1352_s5  }
  0x29   : > { %p24_p2 = scmp.eq.s32.totalorder %s23_s23, 0  ;;  %p33_p1 = scmp.ne.s32.totalorder %s1344_s11, %s1340_s10 }
  0x2a   : > { %p34_p4 = scmp.eq.s32.totalorder %s1348_s12, 0  ;;  %p1182_p6 = scmp.lt.s32.totalorder %s1348_s12, 2 }
  0x2b   : > { %s1457_s8 = scalar_select %p24_p2, %s1344_s11, %s26_s22  }
  0x2c   : > { %p35_p8 = por %p34_p4, %p33_p1  ;;  %p1609_p10 = scmp.eq.s32.totalorder %s1391_s13, 1 }
  0x2d   : > { %s123_s18 = sand.u32 1, %s1344_s11   ;;  %s903_s24 = sshll.u32 %s1348_s12, 7 }
  0x2e   : > { %p1461_p12 = por %p1609_p10, %p33_p1  ;;  %s891_s25 = sshll.u32 %s123_s18, 3 }
  0x2f   : > { %s1470_s27 = scalar_lea.hbm %s1599_s0, %s903_s24  ;;  %s127_s19 = scalar_lea.vmem [#allocation2], %s891_s25 }
  0x30   : > { %s135_s22 = sshll.u32 %s127_s19, 4  ;;  %p1472_p11 = pnand %p1182_p6, %p35_p8  ;;  %s1476_s22 = int_to_ptr.vmem [resolvable:$true] %s135_s22 }
  0x31   : > { %s124_s28 = scalar_lea.sflag [#allocation3], %s123_s18  ;;  %s1248_s29 = scalar_lea.hbm %s1470_s27, 128 }
  0x32   : > { %p1249_p13 = scmp.ne.s32.totalorder %s1470_s27, %s1248_s29  ;;  %p1250_p0 = pneg %p1472_p11 }
  0x33   : > { %s1253_s4 = scalar_lea.hbm %s1599_s0, 256  ;;  %p1254_p7 = scmp.lt.u32.totalorder %s1470_s27, %s1599_s0 }
  0x34   : > { %p1251_p3 = pnand %p1250_p0, %p1249_p13  ;;  %p1255_p9 = scmp.lt.u32.totalorder %s1253_s4, %s1248_s29 }
  0x35   : > { %p1257_p1 = scmp.lt.u32.totalorder %s1248_s29, %s1470_s27 }
  0x36   : > { %p1252_p5 = pneg %p1251_p3  ;;  %p1256_p2 = por %p1255_p9, %p1254_p7 }
  0x38   : > { %p1258_p4 = por %p1257_p1, %p1256_p2 }
  0x3a   : > { %p1259_p6 = pnand %p1258_p4, %p1252_p5 }
  0x3c   : > { %1262 = shalt.err (!%p1259_p6)
}
  0x3d   : > { %s1263_s7 = scalar_lea.vmem %s1476_s22, 128  ;;  %s1353_s18 = smov [#allocation2]  }
  0x3e   : > { %p1264_p8 = scmp.ne.s32.totalorder %s1476_s22, %s1263_s7  ;;  %s1268_s24 = sshll.u32 %s1353_s18, 4  ;;  %s1269_s24 = int_to_ptr.vmem [resolvable:$false] %s1268_s24 }
  0x3f   : > { %s1270_s25 = scalar_lea.vmem %s1269_s24, 256  ;;  %p1271_p3 = scmp.lt.s32.totalorder %s1476_s22, %s1269_s24 }
  0x40   : > { %p1266_p10 = pnand %p1264_p8, %p1250_p0  ;;  %p1272_p7 = scmp.lt.s32.totalorder %s1270_s25, %s1263_s7 }
  0x42   : > { %p1267_p13 = pneg %p1266_p10  ;;  %p1273_p9 = por %p1272_p7, %p1271_p3 }
  0x44   : > { %p1274_p2 = pnand %p1273_p9, %p1267_p13 }
  0x46   : > { %1277 = shalt.err (!%p1274_p2)
}
  0x47   : > { %1176 = dma.hbm_to_vmem [thread:$0]  (!%p1472_p11), %s1470_s27, 128, %s1476_s22, %s124_s28  }
  0x48   : > { %p1612_p5 = scmp.ne.s32.totalorder %s1607_s17, 0 }
  0x49   : > { %s1506_s20 = sand.u32 (!%p1612_p5), 1, %s1340_s10   ;;  %p1613_p0 = scmp.ne.s32.totalorder (!%p1612_p5), %s1605_s15, 0 }
  0x4a   : > { %144 = sbr.rel (%p1612_p5) target bundleno = 450 (0x1c2), region = 28  ;;  %s895_s26 = sshll.u32 (!%p1612_p5), %s1506_s20, 3 }
  0x4b   : > { %s147_s19 = scalar_lea.sflag (!%p1612_p5), [#allocation3], %s1506_s20  ;;  %s1512_s29 = scalar_lea.vmem (!%p1612_p5), [#allocation2], %s895_s26 }
  0x51   : > { %1323 = dma.done.wait (%p1613_p0), %s147_s19, 128  }
  0x52   : > { %1325 = vsyncadd (%p1613_p0), %s147_s19, 4294967168  ;;  %p1614_p11 = scmp.eq.s32.totalorder %s1391_s13, 0 }
  0x54   : > { %1327 = dma.done.wait (%p1614_p11), [#allocation6], 32768   ;;  %p1615_p1 = pmov %p1614_p11 }
  0x55   : > { %v177_v0 = vld [vmem:[#allocation5 + $0x8] sm:$0xff]  ;;  %v179_v1 = vld [vmem:[#allocation5 + $0x18] sm:$0xff]  ;;  %v176_v5 = vld [vmem:[#allocation5] sm:$0xff]  ;;  %vm778_vm0 = vcmask 1040384   ;;  %vm781_vm1 = vcmask 1041408   ;;  %vm784_vm2 = vcmask 1042432  }
  0x56   : > { %1329 = vsyncadd (%p1615_p1), [#allocation6], 4294934528  ;;  %v324_v2 = vld [vmem:[#allocation5 + $0x208] sm:$0xff]  ;;  %v905_v3 = vpack.c.bf16 %v179_v1, %v177_v0  ;;  %v326_v4 = vld [vmem:[#allocation5 + $0x218] sm:$0xff]  ;;  %s904_s15 = sshll.u32 %s1391_s13, 7  ;;  %s174_s17 = scalar_lea.vmem [#allocation7], %s895_s26 }
  0x57   : > { %v178_v6 = vld [vmem:[#allocation5 + $0x10] sm:$0xff]  ;;  %v969_v7 = vpack.c.bf16 %v326_v4, %v324_v2  ;;  %v323_v9 = vld [vmem:[#allocation5 + $0x200] sm:$0xff]  ;;  %v181_v11 = vld [vmem:[#allocation5 + $0x28] sm:$0xff]  ;;  %s807_s27 = sshll.u32 %s174_s17, 4  ;;  %s1555_s28 = scalar_lea.hbm %s1601_s2, %s904_s15  ;;  %s1557_s27 = int_to_ptr.vmem [resolvable:$true] %s807_s27 }
  0x58   : > { %v907_v8 = vpack.c.bf16 %v178_v6, %v176_v5  ;;  %v325_v10 = vld [vmem:[#allocation5 + $0x210] sm:$0xff]  ;;  %906 = vmatprep.subr.bf16.mxu0 %v905_v3  ;;  %v183_v13 = vld [vmem:[#allocation5 + $0x38] sm:$0xff]  ;;  %v328_v14 = vld [vmem:[#allocation5 + $0x228] sm:$0xff]  ;;  %s793_s30 = scalar_lea.sflag [#allocation4], %s1506_s20  ;;  %s1278_s13 = scalar_lea.vmem %s1557_s27, 128 }
  0x59   : > { %v971_v12 = vpack.c.bf16 %v325_v10, %v323_v9  ;;  %v330_v15 = vld [vmem:[#allocation5 + $0x238] sm:$0xff]  ;;  %970 = vmatprep.subr.bf16.mxu1 %v969_v7  ;;  %v909_v16 = vpack.c.bf16 %v183_v13, %v181_v11  ;;  %v180_v18 = vld [vmem:[#allocation5 + $0x20] sm:$0xff]  ;;  %v182_v19 = vld [vmem:[#allocation5 + $0x30] sm:$0xff]  ;;  %p1279_p4 = scmp.ne.s32.totalorder %s1557_s27, %s1278_s13  ;;  %s1354_s3 = smov [#allocation7]  }
  0x5a   : > { %908 = vmatpush1.bf16.msra.mxu0 %v907_v8  ;;  %v973_v17 = vpack.c.bf16 %v330_v15, %v328_v14  ;;  %v327_v20 = vld [vmem:[#allocation5 + $0x220] sm:$0xff]  ;;  %v911_v21 = vpack.c.bf16 %v182_v19, %v180_v18  ;;  %v329_v22 = vld [vmem:[#allocation5 + $0x230] sm:$0xff]  ;;  %v185_v23 = vld [vmem:[#allocation5 + $0x48] sm:$0xff]  ;;  %s1282_s4 = sshll.u32 %s1354_s3, 4  ;;  %s1283_s4 = int_to_ptr.vmem [resolvable:$false] %s1282_s4 }
  0x5b   : > { %972 = vmatpush1.bf16.msra.mxu1 %v971_v12  ;;  %v187_v24 = vld [vmem:[#allocation5 + $0x58] sm:$0xff]  ;;  %910 = vmatprep.subr.bf16.mxu0 %v909_v16  ;;  %v975_v25 = vpack.c.bf16 %v329_v22, %v327_v20  ;;  %v332_v27 = vld [vmem:[#allocation5 + $0x248] sm:$0xff]  ;;  %v184_v29 = vld [vmem:[#allocation5 + $0x40] sm:$0xff]  ;;  %p1280_p6 = pnand %p1279_p4, %p1461_p12  ;;  %s1284_s5 = scalar_lea.vmem %s1283_s4, 256 }
  0x5c   : > { %974 = vmatprep.subr.bf16.mxu1 %v973_v17  ;;  %v913_v26 = vpack.c.bf16 %v187_v24, %v185_v23  ;;  %v334_v28 = vld [vmem:[#allocation5 + $0x258] sm:$0xff]  ;;  %v186_v31 = vld [vmem:[#allocation5 + $0x50] sm:$0xff]  ;;  %v331_v32 = vld [vmem:[#allocation5 + $0x240] sm:$0xff]  ;;  %p1285_p10 = scmp.lt.s32.totalorder %s1557_s27, %s1283_s4  ;;  %p1286_p13 = scmp.lt.s32.totalorder %s1284_s5, %s1278_s13 }
  0x5d   : > { %v977_v30 = vpack.c.bf16 %v334_v28, %v332_v27  ;;  %v333_v33 = vld [vmem:[#allocation5 + $0x250] sm:$0xff]  ;;  %v915_v34 = vpack.c.bf16 %v186_v31, %v184_v29  ;;  %v189_v35 = vld [vmem:[#allocation5 + $0x68] sm:$0xff]  ;;  %v191_v36 = vld [vmem:[#allocation5 + $0x78] sm:$0xff]  ;;  %p1281_p8 = pneg %p1280_p6 }
  0x5e   : > { %912 = vmatpush1.bf16.msra.mxu0 %v911_v21  ;;  %v336_v37 = vld [vmem:[#allocation5 + $0x268] sm:$0xff]  ;;  %v979_v38 = vpack.c.bf16 %v333_v33, %v331_v32  ;;  %v917_v39 = vpack.c.bf16 %v191_v36, %v189_v35  ;;  %v338_v40 = vld [vmem:[#allocation5 + $0x278] sm:$0xff]  ;;  %v188_v41 = vld [vmem:[#allocation5 + $0x60] sm:$0xff]  ;;  %p1287_p3 = por %p1286_p13, %p1285_p10 }
  0x5f   : > { %976 = vmatpush1.bf16.msra.mxu1 %v975_v25  ;;  %914 = vmatprep.subr.bf16.mxu0 %v913_v26  ;;  %v190_v42 = vld [vmem:[#allocation5 + $0x70] sm:$0xff]  ;;  %v981_v43 = vpack.c.bf16 %v338_v40, %v336_v37  ;;  %v335_v44 = vld [vmem:[#allocation5 + $0x260] sm:$0xff]  ;;  %v193_v46 = vld [vmem:[#allocation5 + $0x88] sm:$0xff] }
  0x60   : > { %978 = vmatprep.subr.bf16.mxu1 %v977_v30  ;;  %v337_v45 = vld [vmem:[#allocation5 + $0x270] sm:$0xff]  ;;  %v195_v47 = vld [vmem:[#allocation5 + $0x98] sm:$0xff]  ;;  %v340_v48 = vld [vmem:[#allocation5 + $0x288] sm:$0xff]  ;;  %v919_v50 = vpack.c.bf16 %v190_v42, %v188_v41  ;;  %p1288_p7 = pnand %p1287_p3, %p1281_p8 }
  0x61   : > { %v342_v49 = vld [vmem:[#allocation5 + $0x298] sm:$0xff]  ;;  %v983_v51 = vpack.c.bf16 %v337_v45, %v335_v44  ;;  %v921_v52 = vpack.c.bf16 %v195_v47, %v193_v46  ;;  %v192_v53 = vld [vmem:[#allocation5 + $0x80] sm:$0xff]  ;;  %v194_v54 = vld [vmem:[#allocation5 + $0x90] sm:$0xff]  ;;  %v241_v46 = vlaneseq }
  0x62   : > { %916 = vmatpush1.bf16.msra.mxu0 %v915_v34  ;;  %v339_v55 = vld [vmem:[#allocation5 + $0x280] sm:$0xff]  ;;  %v985_v56 = vpack.c.bf16 %v342_v49, %v340_v48  ;;  %v341_v57 = vld [vmem:[#allocation5 + $0x290] sm:$0xff]  ;;  %v197_v58 = vld [vmem:[#allocation5 + $0xa8] sm:$0xff]  ;;  %v923_v62 = vpack.c.bf16 %v194_v54, %v192_v53 }
  0x63   : > { %980 = vmatpush1.bf16.msra.mxu1 %v979_v38  ;;  %918 = vmatprep.subr.bf16.mxu0 %v917_v39  ;;  %v199_v59 = vld [vmem:[#allocation5 + $0xb8] sm:$0xff]  ;;  %v344_v60 = vld [vmem:[#allocation5 + $0x2a8] sm:$0xff]  ;;  %v987_v63 = vpack.c.bf16 %v341_v57, %v339_v55  ;;  %v196_v1 = vld [vmem:[#allocation5 + $0xa0] sm:$0xff] }
  0x64   : > { %982 = vmatprep.subr.bf16.mxu1 %v981_v43  ;;  %v346_v61 = vld [vmem:[#allocation5 + $0x2b8] sm:$0xff]  ;;  %v925_v0 = vpack.c.bf16 %v199_v59, %v197_v58  ;;  %v198_v2 = vld [vmem:[#allocation5 + $0xb0] sm:$0xff]  ;;  %v343_v3 = vld [vmem:[#allocation5 + $0x2a0] sm:$0xff]  ;;  %v1522_v59 = vshrl.u32 %v241_v46, 7 }
  0x65   : > { %v989_v4 = vpack.c.bf16 %v346_v61, %v344_v60  ;;  %v345_v5 = vld [vmem:[#allocation5 + $0x2b0] sm:$0xff]  ;;  %v201_v6 = vld [vmem:[#allocation5 + $0xc8] sm:$0xff]  ;;  %v203_v7 = vld [vmem:[#allocation5 + $0xd8] sm:$0xff]  ;;  %v927_v10 = vpack.c.bf16 %v198_v2, %v196_v1 }
  0x66   : > { %920 = vmatpush1.bf16.msra.mxu0 %v919_v50  ;;  %v348_v8 = vld [vmem:[#allocation5 + $0x2c8] sm:$0xff]  ;;  %v350_v9 = vld [vmem:[#allocation5 + $0x2d8] sm:$0xff]  ;;  %v991_v11 = vpack.c.bf16 %v345_v5, %v343_v3  ;;  %v929_v12 = vpack.c.bf16 %v203_v7, %v201_v6  ;;  %v200_v13 = vld [vmem:[#allocation5 + $0xc0] sm:$0xff] }
  0x67   : > { %984 = vmatpush1.bf16.msra.mxu1 %v983_v51  ;;  %922 = vmatprep.subr.bf16.mxu0 %v921_v52  ;;  %v202_v14 = vld [vmem:[#allocation5 + $0xd0] sm:$0xff]  ;;  %v347_v15 = vld [vmem:[#allocation5 + $0x2c0] sm:$0xff]  ;;  %v993_v16 = vpack.c.bf16 %v350_v9, %v348_v8  ;;  %v205_v18 = vld [vmem:[#allocation5 + $0xe8] sm:$0xff]  ;;  %v247_v8 = vsub.s32 4, %v1522_v59  ;;  %v393_v9 = vsub.s32 5, %v1522_v59 }
  0x68   : > { %986 = vmatprep.subr.bf16.mxu1 %v985_v56  ;;  %v349_v17 = vld [vmem:[#allocation5 + $0x2d0] sm:$0xff]  ;;  %v207_v19 = vld [vmem:[#allocation5 + $0xf8] sm:$0xff]  ;;  %v352_v20 = vld [vmem:[#allocation5 + $0x2e8] sm:$0xff]  ;;  %v931_v22 = vpack.c.bf16 %v202_v14, %v200_v13 }
  0x69   : > { %v354_v21 = vld [vmem:[#allocation5 + $0x2f8] sm:$0xff]  ;;  %v995_v23 = vpack.c.bf16 %v349_v17, %v347_v15  ;;  %v933_v24 = vpack.c.bf16 %v207_v19, %v205_v18  ;;  %v204_v25 = vld [vmem:[#allocation5 + $0xe0] sm:$0xff]  ;;  %v206_v26 = vld [vmem:[#allocation5 + $0xf0] sm:$0xff]  ;;  %v535_v17 = vsub.s32 2, %v1522_v59 }
  0x6a   : > { %924 = vmatpush1.bf16.msra.mxu0 %v923_v62  ;;  %v351_v27 = vld [vmem:[#allocation5 + $0x2e0] sm:$0xff]  ;;  %v997_v28 = vpack.c.bf16 %v354_v21, %v352_v20  ;;  %v353_v29 = vld [vmem:[#allocation5 + $0x2f0] sm:$0xff]  ;;  %v209_v30 = vld [vmem:[#allocation5 + $0x108] sm:$0xff]  ;;  %v935_v34 = vpack.c.bf16 %v206_v26, %v204_v25 }
  0x6b   : > { %988 = vmatpush1.bf16.msra.mxu1 %v987_v63  ;;  %926 = vmatprep.subr.bf16.mxu0 %v925_v0  ;;  %v211_v31 = vld [vmem:[#allocation5 + $0x118] sm:$0xff]  ;;  %v356_v32 = vld [vmem:[#allocation5 + $0x308] sm:$0xff]  ;;  %v999_v35 = vpack.c.bf16 %v353_v29, %v351_v27  ;;  %v208_v37 = vld [vmem:[#allocation5 + $0x100] sm:$0xff] }
  0x6c   : > { %990 = vmatprep.subr.bf16.mxu1 %v989_v4  ;;  %v358_v33 = vld [vmem:[#allocation5 + $0x318] sm:$0xff]  ;;  %v937_v36 = vpack.c.bf16 %v211_v31, %v209_v30  ;;  %v210_v38 = vld [vmem:[#allocation5 + $0x110] sm:$0xff]  ;;  %v355_v39 = vld [vmem:[#allocation5 + $0x300] sm:$0xff] }
  0x6d   : > { %v1001_v40 = vpack.c.bf16 %v358_v33, %v356_v32  ;;  %v357_v41 = vld [vmem:[#allocation5 + $0x310] sm:$0xff]  ;;  %v213_v42 = vld [vmem:[#allocation5 + $0x128] sm:$0xff]  ;;  %v215_v43 = vld [vmem:[#allocation5 + $0x138] sm:$0xff]  ;;  %v939_v47 = vpack.c.bf16 %v210_v38, %v208_v37 }
  0x6e   : > { %928 = vmatpush1.bf16.msra.mxu0 %v927_v10  ;;  %v360_v44 = vld [vmem:[#allocation5 + $0x328] sm:$0xff]  ;;  %v362_v45 = vld [vmem:[#allocation5 + $0x338] sm:$0xff]  ;;  %v1003_v48 = vpack.c.bf16 %v357_v41, %v355_v39  ;;  %v941_v49 = vpack.c.bf16 %v215_v43, %v213_v42  ;;  %v212_v50 = vld [vmem:[#allocation5 + $0x120] sm:$0xff] }
  0x6f   : > { %992 = vmatpush1.bf16.msra.mxu1 %v991_v11  ;;  %930 = vmatprep.subr.bf16.mxu0 %v929_v12  ;;  %v214_v51 = vld [vmem:[#allocation5 + $0x130] sm:$0xff]  ;;  %v359_v52 = vld [vmem:[#allocation5 + $0x320] sm:$0xff]  ;;  %v1005_v53 = vpack.c.bf16 %v362_v45, %v360_v44  ;;  %v217_v55 = vld [vmem:[#allocation5 + $0x148] sm:$0xff] }
  0x70   : > { %994 = vmatprep.subr.bf16.mxu1 %v993_v16  ;;  %v361_v54 = vld [vmem:[#allocation5 + $0x330] sm:$0xff]  ;;  %v219_v56 = vld [vmem:[#allocation5 + $0x158] sm:$0xff]  ;;  %v364_v57 = vld [vmem:[#allocation5 + $0x348] sm:$0xff]  ;;  %v943_v60 = vpack.c.bf16 %v214_v51, %v212_v50 }
  0x71   : > { %v366_v58 = vld [vmem:[#allocation5 + $0x358] sm:$0xff]  ;;  %v1007_v61 = vpack.c.bf16 %v361_v54, %v359_v52  ;;  %v945_v62 = vpack.c.bf16 %v219_v56, %v217_v55  ;;  %v216_v63 = vld [vmem:[#allocation5 + $0x140] sm:$0xff]  ;;  %v218_v0 = vld [vmem:[#allocation5 + $0x150] sm:$0xff] }
  0x72   : > { %932 = vmatpush1.bf16.msra.mxu0 %v931_v22  ;;  %v363_v1 = vld [vmem:[#allocation5 + $0x340] sm:$0xff]  ;;  %v1009_v2 = vpack.c.bf16 %v366_v58, %v364_v57  ;;  %v365_v3 = vld [vmem:[#allocation5 + $0x350] sm:$0xff]  ;;  %v221_v4 = vld [vmem:[#allocation5 + $0x168] sm:$0xff]  ;;  %v947_v10 = vpack.c.bf16 %v218_v0, %v216_v63  ;;  %v681_v22 = vsub.s32 3, %v1522_v59 }
  0x73   : > { %996 = vmatpush1.bf16.msra.mxu1 %v995_v23  ;;  %934 = vmatprep.subr.bf16.mxu0 %v933_v24  ;;  %v223_v5 = vld [vmem:[#allocation5 + $0x178] sm:$0xff]  ;;  %v368_v6 = vld [vmem:[#allocation5 + $0x368] sm:$0xff]  ;;  %v220_v11 = vld [vmem:[#allocation5 + $0x160] sm:$0xff]  ;;  %v1011_v12 = vpack.c.bf16 %v365_v3, %v363_v1 }
  0x74   : > { %998 = vmatprep.subr.bf16.mxu1 %v997_v28  ;;  %v370_v7 = vld [vmem:[#allocation5 + $0x378] sm:$0xff]  ;;  %v949_v13 = vpack.c.bf16 %v223_v5, %v221_v4  ;;  %v222_v14 = vld [vmem:[#allocation5 + $0x170] sm:$0xff]  ;;  %v367_v15 = vld [vmem:[#allocation5 + $0x360] sm:$0xff] }
  0x75   : > { %v369_v16 = vld [vmem:[#allocation5 + $0x370] sm:$0xff]  ;;  %v1013_v18 = vpack.c.bf16 %v370_v7, %v368_v6  ;;  %v225_v19 = vld [vmem:[#allocation5 + $0x188] sm:$0xff]  ;;  %v227_v20 = vld [vmem:[#allocation5 + $0x198] sm:$0xff]  ;;  %v951_v27 = vpack.c.bf16 %v222_v14, %v220_v11 }
  0x76   : > { %936 = vmatpush1.bf16.msra.mxu0 %v935_v34  ;;  %v1528_v21 = vld [vmem:[%s1512_s29] sm:$0xff]  ;;  %v372_v23 = vld [vmem:[#allocation5 + $0x388] sm:$0xff]  ;;  %v1015_v28 = vpack.c.bf16 %v369_v16, %v367_v15  ;;  %v953_v29 = vpack.c.bf16 %v227_v20, %v225_v19  ;;  %v224_v30 = vld [vmem:[#allocation5 + $0x180] sm:$0xff]  ;;  %v389_v16 = vsub.s32 1, %v1522_v59 }
  0x77   : > { %1000 = vmatpush1.bf16.msra.mxu1 %v999_v35  ;;  %938 = vmatprep.subr.bf16.mxu0 %v937_v36  ;;  %v374_v24 = vld [vmem:[#allocation5 + $0x398] sm:$0xff]  ;;  %v248_v25 = vrot.slane %v1528_v21, %v247_v8  ;;  %v394_v26 = vrot.slane %v1528_v21, %v393_v9  ;;  %v226_v31 = vld [vmem:[#allocation5 + $0x190] sm:$0xff]  ;;  %v371_v32 = vld [vmem:[#allocation5 + $0x380] sm:$0xff]  ;;  %v1534_v33 = vrot.slane %v1528_v21, %v535_v17 }
  0x78   : > { %1002 = vmatprep.subr.bf16.mxu1 %v1001_v40  ;;  %v1017_v34 = vpack.c.bf16 %v374_v24, %v372_v23  ;;  %v373_v35 = vld [vmem:[#allocation5 + $0x390] sm:$0xff]  ;;  %v229_v36 = vld [vmem:[#allocation5 + $0x1a8] sm:$0xff]  ;;  %v231_v37 = vld [vmem:[#allocation5 + $0x1b8] sm:$0xff]  ;;  %v1537_v38 = vrot.slane %v1528_v21, %v681_v22  ;;  %v955_v41 = vpack.c.bf16 %v226_v31, %v224_v30  ;;  %v685_v31 = vsub.s32 7, %v1522_v59 }
  0x79   : > { %315 = vmatprep.mubr.f32.mxu0 %v248_v25  ;;  %v376_v39 = vld [vmem:[#allocation5 + $0x3a8] sm:$0xff]  ;;  %v378_v40 = vld [vmem:[#allocation5 + $0x3b8] sm:$0xff]  ;;  %461 = vmatprep.mubr.f32.mxu1 %v394_v26  ;;  %v1019_v42 = vpack.c.bf16 %v373_v35, %v371_v32  ;;  %v957_v43 = vpack.c.bf16 %v231_v37, %v229_v36  ;;  %v228_v44 = vld [vmem:[#allocation5 + $0x1a0] sm:$0xff]  ;;  %v390_v32 = vrot.slane %v1528_v21, %v389_v16 }
  0x7a   : > { %940 = vmatpush1.bf16.msra.mxu0 %v939_v47  ;;  %v230_v45 = vld [vmem:[#allocation5 + $0x1b0] sm:$0xff]  ;;  %v375_v46 = vld [vmem:[#allocation5 + $0x3a0] sm:$0xff]  ;;  %v1021_v47 = vpack.c.bf16 %v378_v40, %v376_v39  ;;  %v235_v50 = vld [vmem:[#allocation5 + $0x1d8] sm:$0xff] }
  0x7b   : > { %1004 = vmatpush1.bf16.msra.mxu1 %v1003_v48  ;;  %942 = vmatprep.subr.bf16.mxu0 %v941_v49  ;;  %v377_v48 = vld [vmem:[#allocation5 + $0x3b0] sm:$0xff]  ;;  %v233_v49 = vld [vmem:[#allocation5 + $0x1c8] sm:$0xff]  ;;  %v382_v52 = vld [vmem:[#allocation5 + $0x3d8] sm:$0xff] }
  0x7c   : > { %1006 = vmatprep.subr.bf16.mxu1 %v1005_v53  ;;  %v380_v51 = vld [vmem:[#allocation5 + $0x3c8] sm:$0xff]  ;;  %v959_v53 = vpack.c.bf16 %v230_v45, %v228_v44  ;;  %v1023_v54 = vpack.c.bf16 %v377_v48, %v375_v46  ;;  %v961_v55 = vpack.c.bf16 %v235_v50, %v233_v49  ;;  %v232_v56 = vld [vmem:[#allocation5 + $0x1c0] sm:$0xff]  ;;  %v234_v57 = vld [vmem:[#allocation5 + $0x1d0] sm:$0xff] }
  0x7d   : > { %v379_v58 = vld [vmem:[#allocation5 + $0x3c0] sm:$0xff]  ;;  %v239_v63 = vld [vmem:[#allocation5 + $0x1f8] sm:$0xff]  ;;  %v384_v0 = vld [vmem:[#allocation5 + $0x3e8] sm:$0xff] }
  0x7e   : > { %944 = vmatpush1.bf16.msra.mxu0 %v943_v60  ;;  %v1025_v60 = vpack.c.bf16 %v382_v52, %v380_v51  ;;  %v386_v1 = vld [vmem:[#allocation5 + $0x3f8] sm:$0xff]  ;;  %v236_v5 = vld [vmem:[#allocation5 + $0x1e0] sm:$0xff]  ;;  %v238_v6 = vld [vmem:[#allocation5 + $0x1f0] sm:$0xff] }
  0x7f   : > { %1008 = vmatpush1.bf16.msra.mxu1 %v1007_v61  ;;  %946 = vmatprep.subr.bf16.mxu0 %v945_v62  ;;  %v381_v61 = vld [vmem:[#allocation5 + $0x3d0] sm:$0xff]  ;;  %v237_v62 = vld [vmem:[#allocation5 + $0x1e8] sm:$0xff]  ;;  %v383_v7 = vld [vmem:[#allocation5 + $0x3e0] sm:$0xff]  ;;  %v1029_v8 = vpack.c.bf16 %v386_v1, %v384_v0  ;;  %v967_v15 = vpack.c.bf16 %v238_v6, %v236_v5 }
  0x80   : > { %1010 = vmatprep.subr.bf16.mxu1 %v1009_v2  ;;  %v963_v2 = vpack.c.bf16 %v234_v57, %v232_v56  ;;  %v1027_v3 = vpack.c.bf16 %v381_v61, %v379_v58  ;;  %v965_v4 = vpack.c.bf16 %v239_v63, %v237_v62  ;;  %v385_v9 = vld [vmem:[#allocation5 + $0x3f0] sm:$0xff]  ;;  %v472_v11 = vld [vmem:[#allocation5 + $0x418] sm:$0xff]  ;;  %v469_v19 = vld [vmem:[#allocation5 + $0x400] sm:$0xff] }
  0x81   : > { %v618_v14 = vld [vmem:[#allocation5 + $0x618] sm:$0xff]  ;;  %v1031_v17 = vpack.c.bf16 %v385_v9, %v383_v7  ;;  %v471_v20 = vld [vmem:[#allocation5 + $0x410] sm:$0xff]  ;;  %v615_v22 = vld [vmem:[#allocation5 + $0x600] sm:$0xff] }
  0x82   : > { %948 = vmatpush1.bf16.msra.mxu0 %v947_v10  ;;  %v470_v10 = vld [vmem:[#allocation5 + $0x408] sm:$0xff]  ;;  %v617_v24 = vld [vmem:[#allocation5 + $0x610] sm:$0xff]  ;;  %v476_v26 = vld [vmem:[#allocation5 + $0x438] sm:$0xff] }
  0x83   : > { %1012 = vmatpush1.bf16.msra.mxu1 %v1011_v12  ;;  %950 = vmatprep.subr.bf16.mxu0 %v949_v13  ;;  %v243_v12 = vsub.s32 0, %v1522_v59  ;;  %v616_v13 = vld [vmem:[#allocation5 + $0x608] sm:$0xff]  ;;  %v622_v30 = vld [vmem:[#allocation5 + $0x638] sm:$0xff]  ;;  %v1099_v35 = vpack.c.bf16 %v617_v24, %v615_v22  ;;  %v473_v37 = vld [vmem:[#allocation5 + $0x420] sm:$0xff] }
  0x84   : > { %1014 = vmatprep.subr.bf16.mxu1 %v1013_v18  ;;  %v1033_v18 = vpack.c.bf16 %v472_v11, %v470_v10  ;;  %v1097_v23 = vpack.c.bf16 %v618_v14, %v616_v13  ;;  %v474_v25 = vld [vmem:[#allocation5 + $0x428] sm:$0xff]  ;;  %v475_v39 = vld [vmem:[#allocation5 + $0x430] sm:$0xff]  ;;  %v619_v40 = vld [vmem:[#allocation5 + $0x620] sm:$0xff] }
  0x85   : > { %v1037_v36 = vpack.c.bf16 %v476_v26, %v474_v25  ;;  %v480_v44 = vld [vmem:[#allocation5 + $0x458] sm:$0xff]  ;;  %v1039_v48 = vpack.c.bf16 %v475_v39, %v473_v37  ;;  %v477_v51 = vld [vmem:[#allocation5 + $0x440] sm:$0xff]  ;;  %v479_v52 = vld [vmem:[#allocation5 + $0x450] sm:$0xff] }
  0x86   : > { %952 = vmatpush1.bf16.msra.mxu0 %v951_v27  ;;  %v539_v27 = vsub.s32 6, %v1522_v59  ;;  %v624_v59 = vld [vmem:[#allocation5 + $0x648] sm:$0xff]  ;;  %v626_v46 = vld [vmem:[#allocation5 + $0x658] sm:$0xff]  ;;  %v481_v63 = vld [vmem:[#allocation5 + $0x460] sm:$0xff] }
  0x87   : > { %1016 = vmatpush1.bf16.msra.mxu1 %v1015_v28  ;;  %954 = vmatprep.subr.bf16.mxu0 %v953_v29  ;;  %v244_v28 = vrot.slane %v1528_v21, %v243_v12  ;;  %v620_v29 = vld [vmem:[#allocation5 + $0x628] sm:$0xff]  ;;  %v484_v57 = vld [vmem:[#allocation5 + $0x478] sm:$0xff]  ;;  %v483_v0 = vld [vmem:[#allocation5 + $0x470] sm:$0xff] }
  0x88   : > { %1018 = vmatprep.subr.bf16.mxu1 %v1017_v34  ;;  %v1035_v34 = vpack.c.bf16 %v471_v20, %v469_v19  ;;  %v540_v45 = vrot.slane %v1528_v21, %v539_v27  ;;  %v482_v56 = vld [vmem:[#allocation5 + $0x468] sm:$0xff]  ;;  %v627_v1 = vld [vmem:[#allocation5 + $0x660] sm:$0xff]  ;;  %v488_v5 = vld [vmem:[#allocation5 + $0x498] sm:$0xff] }
  0x89   : > { %v628_v58 = vld [vmem:[#allocation5 + $0x668] sm:$0xff]  ;;  %v1045_v62 = vpack.c.bf16 %v484_v57, %v482_v56  ;;  %v634_v7 = vld [vmem:[#allocation5 + $0x698] sm:$0xff]  ;;  %v485_v11 = vld [vmem:[#allocation5 + $0x480] sm:$0xff] }
  0x8a   : > { %956 = vmatpush1.bf16.msra.mxu0 %v955_v41  ;;  %v1101_v41 = vpack.c.bf16 %v622_v30, %v620_v29  ;;  %v632_v6 = vld [vmem:[#allocation5 + $0x688] sm:$0xff]  ;;  %v487_v12 = vld [vmem:[#allocation5 + $0x490] sm:$0xff]  ;;  %v631_v13 = vld [vmem:[#allocation5 + $0x680] sm:$0xff] }
  0x8b   : > { %1020 = vmatpush1.bf16.msra.mxu1 %v1019_v42  ;;  %958 = vmatprep.subr.bf16.mxu0 %v957_v43  ;;  %v621_v42 = vld [vmem:[#allocation5 + $0x630] sm:$0xff]  ;;  %v478_v43 = vld [vmem:[#allocation5 + $0x448] sm:$0xff]  ;;  %v1113_v14 = vpack.c.bf16 %v634_v7, %v632_v6  ;;  %v638_v19 = vld [vmem:[#allocation5 + $0x6b8] sm:$0xff]  ;;  %v1051_v20 = vpack.c.bf16 %v487_v12, %v485_v11 }
  0x8c   : > { %1022 = vmatprep.subr.bf16.mxu1 %v1021_v47  ;;  %v686_v47 = vrot.slane %v1528_v21, %v685_v31  ;;  %v1103_v49 = vpack.c.bf16 %v621_v42, %v619_v40  ;;  %v1041_v50 = vpack.c.bf16 %v480_v44, %v478_v43  ;;  %v1043_v21 = vpack.c.bf16 %v479_v52, %v477_v51  ;;  %v490_v16 = vld [vmem:[#allocation5 + $0x4a8] sm:$0xff]  ;;  %v489_v24 = vld [vmem:[#allocation5 + $0x4a0] sm:$0xff]  ;;  %v491_v25 = vld [vmem:[#allocation5 + $0x4b0] sm:$0xff] }
  0x8d   : > { %v635_v26 = vld [vmem:[#allocation5 + $0x6a0] sm:$0xff]  ;;  %v494_v29 = vld [vmem:[#allocation5 + $0x4c8] sm:$0xff]  ;;  %v496_v30 = vld [vmem:[#allocation5 + $0x4d8] sm:$0xff] }
  0x8e   : > { %960 = vmatpush1.bf16.msra.mxu0 %v959_v53  ;;  %v623_v53 = vld [vmem:[#allocation5 + $0x640] sm:$0xff]  ;;  %v640_v31 = vld [vmem:[#allocation5 + $0x6c8] sm:$0xff]  ;;  %v495_v39 = vld [vmem:[#allocation5 + $0x4d0] sm:$0xff] }
  0x8f   : > { %1024 = vmatpush1.bf16.msra.mxu1 %v1023_v54  ;;  %962 = vmatprep.subr.bf16.mxu0 %v961_v55  ;;  %v1105_v54 = vpack.c.bf16 %v626_v46, %v624_v59  ;;  %v625_v55 = vld [vmem:[#allocation5 + $0x650] sm:$0xff]  ;;  %v493_v37 = vld [vmem:[#allocation5 + $0x4c0] sm:$0xff]  ;;  %v498_v43 = vld [vmem:[#allocation5 + $0x4e8] sm:$0xff] }
  0x90   : > { %1026 = vmatprep.subr.bf16.mxu1 %v1025_v60  ;;  %v630_v60 = vld [vmem:[#allocation5 + $0x678] sm:$0xff]  ;;  %v1107_v61 = vpack.c.bf16 %v625_v55, %v623_v53  ;;  %v639_v40 = vld [vmem:[#allocation5 + $0x6c0] sm:$0xff]  ;;  %v641_v42 = vld [vmem:[#allocation5 + $0x6d0] sm:$0xff]  ;;  %v1059_v46 = vpack.c.bf16 %v495_v39, %v493_v37 }
  0x91   : > { %v500_v44 = vld [vmem:[#allocation5 + $0x4f8] sm:$0xff]  ;;  %v643_v51 = vld [vmem:[#allocation5 + $0x6e0] sm:$0xff]  ;;  %v645_v53 = vld [vmem:[#allocation5 + $0x6f0] sm:$0xff] }
  0x92   : > { %964 = vmatpush1.bf16.msra.mxu0 %v963_v2  ;;  %v1109_v2 = vpack.c.bf16 %v630_v60, %v628_v58  ;;  %v646_v59 = vld [vmem:[#allocation5 + $0x6f8] sm:$0xff]  ;;  %v648_v56 = vld [vmem:[#allocation5 + $0x708] sm:$0xff]  ;;  %v1127_v60 = vpack.c.bf16 %v645_v53, %v643_v51  ;;  %v651_v11 = vld [vmem:[#allocation5 + $0x720] sm:$0xff] }
  0x93   : > { %1028 = vmatpush1.bf16.msra.mxu1 %v1027_v3  ;;  %966 = vmatprep.subr.bf16.mxu0 %v965_v4  ;;  %v629_v3 = vld [vmem:[#allocation5 + $0x670] sm:$0xff]  ;;  %v486_v4 = vld [vmem:[#allocation5 + $0x488] sm:$0xff]  ;;  %v504_v55 = vld [vmem:[#allocation5 + $0x518] sm:$0xff] }
  0x94   : > { %1030 = vmatprep.subr.bf16.mxu1 %v1029_v8  ;;  %v1047_v8 = vpack.c.bf16 %v483_v0, %v481_v63  ;;  %v1111_v9 = vpack.c.bf16 %v629_v3, %v627_v1  ;;  %v1049_v10 = vpack.c.bf16 %v488_v5, %v486_v4  ;;  %v650_v57 = vld [vmem:[#allocation5 + $0x718] sm:$0xff]  ;;  %v647_v63 = vld [vmem:[#allocation5 + $0x700] sm:$0xff]  ;;  %v649_v1 = vld [vmem:[#allocation5 + $0x710] sm:$0xff] }
  0x95   : > { %v1129_v0 = vpack.c.bf16 %v650_v57, %v648_v56  ;;  %v508_v3 = vld [vmem:[#allocation5 + $0x538] sm:$0xff]  ;;  %v652_v4 = vld [vmem:[#allocation5 + $0x728] sm:$0xff]  ;;  %v1131_v7 = vpack.c.bf16 %v649_v1, %v647_v63  ;;  %v659_v37 = vld [vmem:[#allocation5 + $0x760] sm:$0xff] }
  0x96   : > { %968 = vmatpush1.bf16.msra.mxu0 %v967_v15  ;;  %v633_v15 = vld [vmem:[#allocation5 + $0x690] sm:$0xff]  ;;  %v654_v5 = vld [vmem:[#allocation5 + $0x738] sm:$0xff] }
  0x97   : > { %1032 = vmatpush1.bf16.msra.mxu1 %v1031_v17  ;;  %1034 = vmatprep.subr.bf16.mxu0 %v1033_v18  ;;  %v492_v17 = vld [vmem:[#allocation5 + $0x4b8] sm:$0xff]  ;;  %v636_v18 = vld [vmem:[#allocation5 + $0x6a8] sm:$0xff]  ;;  %v1115_v22 = vpack.c.bf16 %v633_v15, %v631_v13  ;;  %v1133_v12 = vpack.c.bf16 %v654_v5, %v652_v4  ;;  %v653_v13 = vld [vmem:[#allocation5 + $0x730] sm:$0xff] }
  0x98   : > { %1098 = vmatprep.subr.bf16.mxu1 %v1097_v23  ;;  %v1053_v23 = vpack.c.bf16 %v492_v17, %v490_v16  ;;  %v1117_v27 = vpack.c.bf16 %v638_v19, %v636_v18  ;;  %v512_v15 = vld [vmem:[#allocation5 + $0x558] sm:$0xff]  ;;  %v656_v16 = vld [vmem:[#allocation5 + $0x748] sm:$0xff]  ;;  %v1135_v19 = vpack.c.bf16 %v653_v13, %v651_v11  ;;  %v665_v51 = vld [vmem:[#allocation5 + $0x790] sm:$0xff] }
  0x99   : > { %316 = vmatmul.mubr.f32.vlgmr.msra.gmra.mrb[0].mxu0 %v244_v28  ;;  %v637_v28 = vld [vmem:[#allocation5 + $0x6b0] sm:$0xff]  ;;  %v658_v17 = vld [vmem:[#allocation5 + $0x758] sm:$0xff] }
  0x9a   : > { %462 = vmatmul.mubr.f32.vlgmr.msra.gmra.mrb[0].mxu1 %v390_v32  ;;  %1036 = vmatpush1.bf16.msra.mxu0 %v1035_v34  ;;  %v642_v32 = vld [vmem:[#allocation5 + $0x6d8] sm:$0xff]  ;;  %v1055_v34 = vpack.c.bf16 %v491_v25, %v489_v24  ;;  %v655_v24 = vld [vmem:[#allocation5 + $0x740] sm:$0xff]  ;;  %v1137_v25 = vpack.c.bf16 %v658_v17, %v656_v16  ;;  %v669_v63 = vld [vmem:[#allocation5 + $0x7b0] sm:$0xff] }
  0x9b   : > { %1100 = vmatpush1.bf16.msra.mxu1 %v1099_v35  ;;  %1038 = vmatprep.subr.bf16.mxu0 %v1037_v36  ;;  %v1119_v35 = vpack.c.bf16 %v637_v28, %v635_v26  ;;  %v1057_v36 = vpack.c.bf16 %v496_v30, %v494_v29  ;;  %v657_v26 = vld [vmem:[#allocation5 + $0x750] sm:$0xff]  ;;  %v516_v28 = vld [vmem:[#allocation5 + $0x578] sm:$0xff]  ;;  %v660_v29 = vld [vmem:[#allocation5 + $0x768] sm:$0xff] }
  0x9c   : > { %1102 = vmatprep.subr.bf16.mxu1 %v1101_v41  ;;  %607 = vmatprep.mubr.f32.mxu0 %v540_v45  ;;  %v1121_v41 = vpack.c.bf16 %v642_v32, %v640_v31  ;;  %v644_v45 = vld [vmem:[#allocation5 + $0x6e8] sm:$0xff]  ;;  %v662_v30 = vld [vmem:[#allocation5 + $0x778] sm:$0xff]  ;;  %v1139_v32 = vpack.c.bf16 %v657_v26, %v655_v24  ;;  %v673_v11 = vld [vmem:[#allocation5 + $0x7d0] sm:$0xff] }
  0x9d   : > { %753 = vmatprep.mubr.f32.mxu1 %v686_v47  ;;  %v1123_v47 = vpack.c.bf16 %v641_v42, %v639_v40  ;;  %v1125_v52 = vpack.c.bf16 %v646_v59, %v644_v45  ;;  %v1141_v39 = vpack.c.bf16 %v662_v30, %v660_v29  ;;  %v661_v40 = vld [vmem:[#allocation5 + $0x770] sm:$0xff]  ;;  %v520_v42 = vld [vmem:[#allocation5 + $0x598] sm:$0xff] }
  0x9e   : > { %1040 = vmatpush1.bf16.msra.mxu0 %v1039_v48  ;;  %v1061_v48 = vpack.c.bf16 %v500_v44, %v498_v43  ;;  %v664_v43 = vld [vmem:[#allocation5 + $0x788] sm:$0xff]  ;;  %v666_v44 = vld [vmem:[#allocation5 + $0x798] sm:$0xff]  ;;  %v1143_v59 = vpack.c.bf16 %v661_v40, %v659_v37  ;;  %v677_v24 = vld [vmem:[#allocation5 + $0x7f0] sm:$0xff] }
  0x9f   : > { %1104 = vmatpush1.bf16.msra.mxu1 %v1103_v49  ;;  %1042 = vmatprep.subr.bf16.mxu0 %v1041_v50  ;;  %v497_v49 = vld [vmem:[#allocation5 + $0x4e0] sm:$0xff]  ;;  %v499_v50 = vld [vmem:[#allocation5 + $0x4f0] sm:$0xff]  ;;  %v524_v53 = vld [vmem:[#allocation5 + $0x5b8] sm:$0xff] }
  0xa0   : > { %1106 = vmatprep.subr.bf16.mxu1 %v1105_v54  ;;  %v502_v54 = vld [vmem:[#allocation5 + $0x508] sm:$0xff]  ;;  %v1063_v58 = vpack.c.bf16 %v499_v50, %v497_v49  ;;  %v663_v49 = vld [vmem:[#allocation5 + $0x780] sm:$0xff]  ;;  %v1145_v50 = vpack.c.bf16 %v666_v44, %v664_v43  ;;  %v528_v1 = vld [vmem:[#allocation5 + $0x5d8] sm:$0xff] }
  0xa1   : > { %v1147_v57 = vpack.c.bf16 %v665_v51, %v663_v49  ;;  %v532_v13 = vld [vmem:[#allocation5 + $0x5f8] sm:$0xff] }
  0xa2   : > { %1044 = vmatpush1.bf16.msra.mxu0 %v1043_v21  ;;  %v1065_v21 = vpack.c.bf16 %v504_v55, %v502_v54  ;;  %v668_v54 = vld [vmem:[#allocation5 + $0x7a8] sm:$0xff]  ;;  %v670_v55 = vld [vmem:[#allocation5 + $0x7b8] sm:$0xff] }
  0xa3   : > { %1108 = vmatpush1.bf16.msra.mxu1 %v1107_v61  ;;  %1046 = vmatprep.subr.bf16.mxu0 %v1045_v62  ;;  %v501_v61 = vld [vmem:[#allocation5 + $0x500] sm:$0xff]  ;;  %v503_v62 = vld [vmem:[#allocation5 + $0x510] sm:$0xff] }
  0xa4   : > { %1110 = vmatprep.subr.bf16.mxu1 %v1109_v2  ;;  %v506_v2 = vld [vmem:[#allocation5 + $0x528] sm:$0xff]  ;;  %v1067_v6 = vpack.c.bf16 %v503_v62, %v501_v61  ;;  %v667_v61 = vld [vmem:[#allocation5 + $0x7a0] sm:$0xff]  ;;  %v1149_v62 = vpack.c.bf16 %v670_v55, %v668_v54 }
  0xa5   : > { %v1151_v5 = vpack.c.bf16 %v669_v63, %v667_v61 }
  0xa6   : > { %1048 = vmatpush1.bf16.msra.mxu0 %v1047_v8  ;;  %v1069_v8 = vpack.c.bf16 %v508_v3, %v506_v2  ;;  %v672_v2 = vld [vmem:[#allocation5 + $0x7c8] sm:$0xff]  ;;  %v674_v3 = vld [vmem:[#allocation5 + $0x7d8] sm:$0xff] }
  0xa7   : > { %1112 = vmatpush1.bf16.msra.mxu1 %v1111_v9  ;;  %1050 = vmatprep.subr.bf16.mxu0 %v1049_v10  ;;  %v505_v9 = vld [vmem:[#allocation5 + $0x520] sm:$0xff]  ;;  %v507_v10 = vld [vmem:[#allocation5 + $0x530] sm:$0xff] }
  0xa8   : > { %1114 = vmatprep.subr.bf16.mxu1 %v1113_v14  ;;  %v510_v14 = vld [vmem:[#allocation5 + $0x548] sm:$0xff]  ;;  %v1071_v18 = vpack.c.bf16 %v507_v10, %v505_v9  ;;  %v671_v9 = vld [vmem:[#allocation5 + $0x7c0] sm:$0xff]  ;;  %v1153_v10 = vpack.c.bf16 %v674_v3, %v672_v2 }
  0xa9   : > { %v1155_v17 = vpack.c.bf16 %v673_v11, %v671_v9 }
  0xaa   : > { %1052 = vmatpush1.bf16.msra.mxu0 %v1051_v20  ;;  %v1073_v20 = vpack.c.bf16 %v512_v15, %v510_v14  ;;  %v676_v14 = vld [vmem:[#allocation5 + $0x7e8] sm:$0xff]  ;;  %v678_v15 = vld [vmem:[#allocation5 + $0x7f8] sm:$0xff] }
  0xab   : > { %1116 = vmatpush1.bf16.msra.mxu1 %v1115_v22  ;;  %1054 = vmatprep.subr.bf16.mxu0 %v1053_v23  ;;  %v509_v22 = vld [vmem:[#allocation5 + $0x540] sm:$0xff]  ;;  %v511_v23 = vld [vmem:[#allocation5 + $0x550] sm:$0xff] }
  0xac   : > { %1118 = vmatprep.subr.bf16.mxu1 %v1117_v27  ;;  %v514_v27 = vld [vmem:[#allocation5 + $0x568] sm:$0xff]  ;;  %v1075_v31 = vpack.c.bf16 %v511_v23, %v509_v22  ;;  %v1157_v22 = vpack.c.bf16 %v678_v15, %v676_v14  ;;  %v675_v23 = vld [vmem:[#allocation5 + $0x7e0] sm:$0xff] }
  0xad   : > { %v1159_v26 = vpack.c.bf16 %v677_v24, %v675_v23 }
  0xae   : > { %1056 = vmatpush1.bf16.msra.mxu0 %v1055_v34  ;;  %v1077_v34 = vpack.c.bf16 %v516_v28, %v514_v27 }
  0xaf   : > { %1120 = vmatpush1.bf16.msra.mxu1 %v1119_v35  ;;  %1058 = vmatprep.subr.bf16.mxu0 %v1057_v36  ;;  %v513_v35 = vld [vmem:[#allocation5 + $0x560] sm:$0xff]  ;;  %v515_v36 = vld [vmem:[#allocation5 + $0x570] sm:$0xff] }
  0xb0   : > { %1122 = vmatprep.subr.bf16.mxu1 %v1121_v41  ;;  %v518_v41 = vld [vmem:[#allocation5 + $0x588] sm:$0xff]  ;;  %v1079_v45 = vpack.c.bf16 %v515_v36, %v513_v35 }
  0xb2   : > { %1060 = vmatpush1.bf16.msra.mxu0 %v1059_v46  ;;  %v1081_v46 = vpack.c.bf16 %v520_v42, %v518_v41 }
  0xb3   : > { %1124 = vmatpush1.bf16.msra.mxu1 %v1123_v47  ;;  %1062 = vmatprep.subr.bf16.mxu0 %v1061_v48  ;;  %v517_v47 = vld [vmem:[#allocation5 + $0x580] sm:$0xff]  ;;  %v519_v48 = vld [vmem:[#allocation5 + $0x590] sm:$0xff] }
  0xb4   : > { %1126 = vmatprep.subr.bf16.mxu1 %v1125_v52  ;;  %v522_v52 = vld [vmem:[#allocation5 + $0x5a8] sm:$0xff]  ;;  %v1083_v56 = vpack.c.bf16 %v519_v48, %v517_v47 }
  0xb6   : > { %1064 = vmatpush1.bf16.msra.mxu0 %v1063_v58  ;;  %v1085_v58 = vpack.c.bf16 %v524_v53, %v522_v52 }
  0xb7   : > { %1128 = vmatpush1.bf16.msra.mxu1 %v1127_v60  ;;  %1066 = vmatprep.subr.bf16.mxu0 %v1065_v21  ;;  %v521_v60 = vld [vmem:[#allocation5 + $0x5a0] sm:$0xff]  ;;  %v523_v21 = vld [vmem:[#allocation5 + $0x5b0] sm:$0xff] }
  0xb8   : > { %1130 = vmatprep.subr.bf16.mxu1 %v1129_v0  ;;  %v526_v0 = vld [vmem:[#allocation5 + $0x5c8] sm:$0xff]  ;;  %v1087_v4 = vpack.c.bf16 %v523_v21, %v521_v60 }
  0xba   : > { %1068 = vmatpush1.bf16.msra.mxu0 %v1067_v6  ;;  %v1089_v6 = vpack.c.bf16 %v528_v1, %v526_v0 }
  0xbb   : > { %1132 = vmatpush1.bf16.msra.mxu1 %v1131_v7  ;;  %1070 = vmatprep.subr.bf16.mxu0 %v1069_v8  ;;  %v525_v7 = vld [vmem:[#allocation5 + $0x5c0] sm:$0xff]  ;;  %v527_v8 = vld [vmem:[#allocation5 + $0x5d0] sm:$0xff] }
  0xbc   : > { %1134 = vmatprep.subr.bf16.mxu1 %v1133_v12  ;;  %v530_v12 = vld [vmem:[#allocation5 + $0x5e8] sm:$0xff]  ;;  %v1091_v16 = vpack.c.bf16 %v527_v8, %v525_v7 }
  0xbe   : > { %1072 = vmatpush1.bf16.msra.mxu0 %v1071_v18  ;;  %v1093_v18 = vpack.c.bf16 %v532_v13, %v530_v12 }
  0xbf   : > { %1136 = vmatpush1.bf16.msra.mxu1 %v1135_v19  ;;  %1074 = vmatprep.subr.bf16.mxu0 %v1073_v20  ;;  %v529_v19 = vld [vmem:[#allocation5 + $0x5e0] sm:$0xff]  ;;  %v531_v20 = vld [vmem:[#allocation5 + $0x5f0] sm:$0xff] }
  0xc0   : > { %1138 = vmatprep.subr.bf16.mxu1 %v1137_v25  ;;  %v1095_v25 = vpack.c.bf16 %v531_v20, %v529_v19 }
  0xc2   : > { %1076 = vmatpush1.bf16.msra.mxu0 %v1075_v31 }
  0xc3   : > { %1140 = vmatpush1.bf16.msra.mxu1 %v1139_v32  ;;  %1078 = vmatprep.subr.bf16.mxu0 %v1077_v34 }
  0xc4   : > { %1142 = vmatprep.subr.bf16.mxu1 %v1141_v39 }
  0xc6   : > { %1080 = vmatpush1.bf16.msra.mxu0 %v1079_v45 }
  0xc7   : > { %1144 = vmatpush1.bf16.msra.mxu1 %v1143_v59  ;;  %1082 = vmatprep.subr.bf16.mxu0 %v1081_v46 }
  0xc8   : > { %1146 = vmatprep.subr.bf16.mxu1 %v1145_v50 }
  0xca   : > { %1084 = vmatpush1.bf16.msra.mxu0 %v1083_v56 }
  0xcb   : > { %1148 = vmatpush1.bf16.msra.mxu1 %v1147_v57  ;;  %1086 = vmatprep.subr.bf16.mxu0 %v1085_v58 }
  0xcc   : > { %1150 = vmatprep.subr.bf16.mxu1 %v1149_v62 }
  0xce   : > { %1088 = vmatpush1.bf16.msra.mxu0 %v1087_v4 }
  0xcf   : > { %1152 = vmatpush1.bf16.msra.mxu1 %v1151_v5  ;;  %1090 = vmatprep.subr.bf16.mxu0 %v1089_v6 }
  0xd0   : > { %1154 = vmatprep.subr.bf16.mxu1 %v1153_v10 }
  0xd2   : > { %1092 = vmatpush1.bf16.msra.mxu0 %v1091_v16 }
  0xd3   : > { %1156 = vmatpush1.bf16.msra.mxu1 %v1155_v17  ;;  %1094 = vmatprep.subr.bf16.mxu0 %v1093_v18 }
  0xd4   : > { %1158 = vmatprep.subr.bf16.mxu1 %v1157_v22 }
  0xd6   : > { %1096 = vmatpush1.bf16.msra.mxu0 %v1095_v25 }
  0xd7   : > { %1160 = vmatpush1.bf16.msra.mxu1 %v1159_v26 }
  0xd9   : > { %608 = vmatmul.mubr.f32.vlgmr.msra.gmra.mrb[2].mxu0 %v1534_v33 }
  0xda   : > { %754 = vmatmul.mubr.f32.vlgmr.msra.gmra.mrb[2].mxu1 %v1537_v38 }
 0x16c   : > { %v317_v27 = vpop.f32.mrb[0].mxu0 }
 0x16d   : > { %v463_v28 = vpop.f32.mrb[0].mxu1  ;;  %v319_v29 = vpop.f32.mrb[1].mxu0 }
 0x16e   : > { %v762_v30 = vrot.slane %v463_v28, 7  ;;  %v465_v31 = vpop.f32.mrb[1].mxu1 }
 0x16f   : > { %v763_v32 = vrot.slane %v465_v31, 7 }
 0x170   : > { %v779_v34 = vsel %vm778_vm0, %v317_v27, %v762_v30 }
 0x171   : > { %v780_v35 = vsel %vm778_vm0, %v319_v29, %v763_v32 }
 0x1ac   : > { %v609_v36 = vpop.f32.mrb[2].mxu0 }
 0x1ad   : > { %v768_v37 = vrot.slane %v609_v36, 6  ;;  %v755_v39 = vpop.f32.mrb[2].mxu1  ;;  %v611_v40 = vpop.f32.mrb[3].mxu0 }
 0x1ae   : > { %v774_v33 = vrot.slane %v755_v39, 5  ;;  %v769_v38 = vrot.slane %v611_v40, 6  ;;  %v757_v41 = vpop.f32.mrb[3].mxu1 }
 0x1af   : > { %v782_v42 = vsel %vm781_vm1, %v779_v34, %v768_v37  ;;  %v775_v43 = vrot.slane %v757_v41, 5 }
 0x1b0   : > { %v785_v44 = vsel %vm784_vm2, %v782_v42, %v774_v33  ;;  %v783_v45 = vsel %vm781_vm1, %v780_v35, %v769_v38 }
 0x1b1   : > { %v786_v59 = vsel %vm784_vm2, %v783_v45, %v775_v43 }
 0x1b2   : > { %v789_v46 = vcombine.low %v785_v44, %v786_v59 }
 0x1b4   : > { %791 = vst [vmem:[%s174_s17] sm:$0xff] %v789_v46 }
 0x1b5   : > { %1291 = shalt.err (!%p1288_p7)
}
 0x1b6   : > { %s1292_s6 = scalar_lea.hbm %s1555_s28, 128  ;;  %s1296_s24 = scalar_lea.hbm %s1601_s2, 256 }
 0x1b7   : > { %p1293_p9 = scmp.ne.s32.totalorder %s1555_s28, %s1292_s6  ;;  %p1297_p0 = scmp.lt.u32.totalorder %s1555_s28, %s1601_s2 }
 0x1b8   : > { %p1298_p11 = scmp.lt.u32.totalorder %s1296_s24, %s1292_s6  ;;  %p1300_p4 = scmp.lt.u32.totalorder %s1292_s6, %s1555_s28 }
 0x1b9   : > { %p1294_p2 = pnand %p1293_p9, %p1461_p12 }
 0x1ba   : > { %p1299_p1 = por %p1298_p11, %p1297_p0 }
 0x1bb   : > { %p1295_p5 = pneg %p1294_p2 }
 0x1bc   : > { %p1301_p6 = por %p1300_p4, %p1299_p1 }
 0x1be   : > { %p1302_p8 = pnand %p1301_p6, %p1295_p5 }
 0x1c0   : > { %1305 = shalt.err (!%p1302_p8)
}
 0x1c1   : > { %1167 = dma.vmem_to_hbm [thread:$0]  (%p1461_p12), %s1557_s27, 128, %s1555_s28, %s793_s30  }
 0x1c2 PF: > { %s819_s26 = sand.u32 1, %s1336_s9   ;;  %p1616_p10 = scmp.ne.s32.totalorder %s1606_s16, 0 }
 0x1c3   : > { %p1617_p13 = scmp.ge.s32.totalorder %s1348_s12, 2  ;;  %s820_s19 = scalar_lea.sflag [#allocation4], %s819_s26 }
 0x1c5   : > { %p1178_p3 = pnand %p1617_p13, %p1616_p10 }
 0x1c7   : > { %1331 = dma.done.wait (!%p1178_p3), %s820_s19, 128  }
 0x1c8   : > { %1333 = vsyncadd (!%p1178_p3), %s820_s19, 4294967168  ;;  %p16_p7 = scmp.ge.s32.totalorder %s1426_s21, 4   ;;  %s1618_s9 = smov %s1340_s10 }
 0x1c9   : > { %s1619_s10 = smov %s1344_s11  ;;  %s1620_s11 = smov %s1457_s8 }
 0x1ca   : > { %s1621_s12 = smov %s1426_s21  ;;  %18 = sbr.rel (!%p16_p7) target bundleno = 6 (0x6), region = 80 }
 0x1d1   :  { %825 = vsyncpa [#allocation3], 1 }
 0x1d2   :  { %827 = vsyncpa [#allocation3 + $0x1], 1 }
 0x1d3   :  { %828 = vsyncpa [#allocation6], 1 }
 0x1d4   :  { %829 = vsyncpa [#allocation4], 1 }
 0x1d5   :  { %831 = vsyncpa [#allocation4 + $0x1], 1 }

</bundles_post_ra>
